<compile_context>
chip_gen: v5e
topology: v5e:2x2
jax: 0.10.0
libtpu: 0.0.40
codegen_flags: <defaults>
</compile_context>

<pallas_src>
import functools

import jax
import jax.numpy as jnp
from jax import lax
from jax.experimental import pallas as pl
from jax.experimental.pallas import tpu as pltpu


# ---------------------------------------------------------------------------
# Pallas kernel: the whole Decoder is one MXU matmul + bias (lane-dense output)
# ---------------------------------------------------------------------------
def _decoder_kernel(x_ref, w_ref, b_ref, o_ref):
    o_ref[...] = (jnp.dot(x_ref[...], w_ref[...],
                          preferred_element_type=jnp.float32)
                  + b_ref[...])


def _pick_tn(n):
    # Full-extent block for small decoders; 128-aligned tiles once N grows.
    if n % 128 != 0:
        return n
    return min(n, 2048)


def _decoder_call(x, w_eff, b_eff):
    B, ld = x.shape
    N = w_eff.shape[1]
    tn = _pick_tn(N)
    return pl.pallas_call(
        _decoder_kernel,
        out_shape=jax.ShapeDtypeStruct((B, N), jnp.float32),
        grid=(pl.cdiv(N, tn),),
        in_specs=[
            pl.BlockSpec((B, ld), lambda j: (0, 0)),   # latents (resident across j)
            pl.BlockSpec((ld, tn), lambda j: (0, j)),  # fused weight, N-tiled
            pl.BlockSpec((1, tn), lambda j: (0, j)),   # fused bias,   N-tiled
        ],
        out_specs=pl.BlockSpec((B, tn), lambda j: (0, j)),
        compiler_params=pltpu.CompilerParams(
            dimension_semantics=("parallel",)),        # lets v7x shard N tiles across TCs
    )(x, w_eff, b_eff)


# ---------------------------------------------------------------------------
# One-time parameter preparation (hoisted out of the jitted forward).
# Folds Linear + reshape + ConvTranspose2d into a single (ld, Ho*Wo) matrix.
# ---------------------------------------------------------------------------
def prepare_params(params, *, out_size, kernel, channels):
    C, H, W, K = channels, out_size, out_size, kernel
    pad = (K - 1) // 2
    q = K - 1 - pad                      # ConvTranspose(stride=1) == conv with flipped kernel, pad q
    ld = params["linear_w"].shape[1]

    w_conv = jnp.flip(params["convt_w"], (-2, -1)).transpose(1, 0, 2, 3)   # (1, C, K, K) OIHW

    def convt_nobias(d_nchw):
        return lax.conv_general_dilated(
            d_nchw, w_conv, window_strides=(1, 1), padding=[(q, q), (q, q)],
            dimension_numbers=("NCHW", "OIHW", "NCHW"))

    Ho = H + K - 1 - 2 * pad
    Wo = W + K - 1 - 2 * pad

    # Effective weight: push each Linear output basis row through the (bias-free) convT.
    wt = params["linear_w"].T.reshape(ld, C, H, W)                    # (ld, C, H, W)
    w_eff = convt_nobias(wt).reshape(ld, Ho * Wo).astype(jnp.float32)
    # Effective bias: Linear bias through the convT, plus the convT bias.
    b_eff = (convt_nobias(params["linear_b"].reshape(1, C, H, W)).reshape(1, Ho * Wo)
             + params["convt_b"].reshape(1, 1)).astype(jnp.float32)
    return {"w_eff": w_eff, "b_eff": b_eff}


# ---------------------------------------------------------------------------
# Forward: one pallas_call + a free metadata reshape to NCHW
# ---------------------------------------------------------------------------
def decoder_forward(x, prep, *, out_size, kernel, channels):
    B = x.shape[0]
    pad = (kernel - 1) // 2
    Ho = out_size + kernel - 1 - 2 * pad
    Wo = Ho
    out_flat = _decoder_call(x.astype(jnp.float32), prep["w_eff"], prep["b_eff"])
    return out_flat.reshape(B, 1, Ho, Wo)


# ---------------------------------------------------------------------------
# Deterministic parameter init (torch shapes from Decoder.__init__)
# ---------------------------------------------------------------------------
def init_params(key, *, out_size, kernel, channels, ld):
    flat = out_size * out_size * channels
    ks = jax.random.split(key, 4)
    s = 0.05
    return {
        "linear_w": s * jax.random.normal(ks[0], (flat, ld), jnp.float32),   # nn.Linear.weight
        "linear_b": s * jax.random.normal(ks[1], (flat,), jnp.float32),
        "convt_w": s * jax.random.normal(ks[2], (channels, 1, kernel, kernel), jnp.float32),
        "convt_b": s * jax.random.normal(ks[3], (1,), jnp.float32),
    }


# ---------------------------------------------------------------------------
# Independent pure-JAX reference of the module semantics (XLA conv path)
# ---------------------------------------------------------------------------
def reference_forward(x, params, *, out_size, kernel, channels):
    B = x.shape[0]
    C, H, K = channels, out_size, kernel
    pad = (K - 1) // 2
    q = K - 1 - pad
    d = x @ params["linear_w"].T + params["linear_b"]
    d = d.reshape(B, C, H, H)
    w_conv = jnp.flip(params["convt_w"], (-2, -1)).transpose(1, 0, 2, 3)   # (1, C, K, K) OIHW
    out = lax.conv_general_dilated(d, w_conv, window_strides=(1, 1),
                                   padding=[(q, q), (q, q)],
                                   dimension_numbers=("NCHW", "OIHW", "NCHW"))
    return out + params["convt_b"].reshape(1, 1, 1, 1)


if __name__ == "__main__":
    # Shapes consistent with the module: Decoder(out_size=16, kernel=3, channels=4, ld=32)
    B, OUT_SIZE, KERNEL, CHANNELS, LD = 2, 16, 3, 4, 32

    key = jax.random.PRNGKey(0)
    k_x, k_p = jax.random.split(key)
    x = jax.random.normal(k_x, (B, LD), jnp.float32)      # latent input to the Decoder
    params = init_params(k_p, out_size=OUT_SIZE, kernel=KERNEL, channels=CHANNELS, ld=LD)

    # One-time weight fusion (outside the jitted forward).
    prep = jax.tree_util.tree_map(jax.block_until_ready,
                                  prepare_params(params, out_size=OUT_SIZE,
                                                 kernel=KERNEL, channels=CHANNELS))

    fwd = jax.jit(functools.partial(decoder_forward, out_size=OUT_SIZE,
                                    kernel=KERNEL, channels=CHANNELS))
    y = jax.block_until_ready(fwd(x, prep))
    assert y.shape == (B, 1, OUT_SIZE, OUT_SIZE), y.shape

    y_ref = reference_forward(x, params, out_size=OUT_SIZE, kernel=KERNEL, channels=CHANNELS)
    max_err = float(jnp.max(jnp.abs(y - y_ref)))
    # Pure-f32 path (weight fusion just reassociates the sums) -> tight tolerance.
    assert jnp.allclose(y, y_ref, atol=1e-3, rtol=1e-3), max_err

    print("KERNEL_OK")
</pallas_src>

<mosaic_0001>
module attributes {stable_mosaic.version = 11 : i64} {
  func.func @_decoder_kernel(%arg0: i32, %arg1: memref<2x32xf32, #tpu.memory_space<vmem>>, %arg2: memref<32x256xf32, #tpu.memory_space<vmem>>, %arg3: memref<1x256xf32, #tpu.memory_space<vmem>>, %arg4: memref<2x256xf32, #tpu.memory_space<vmem>>) attributes {dimension_semantics = [#tpu.dimension_semantics<parallel>], iteration_bounds = array<i64: 1>, scalar_prefetch = 0 : i64, scratch_operands = 0 : i64, tpu.core_type = #tpu.core_type<tc>, window_params = [{pipeline_mode = #tpu.pipeline_mode<synchronous>, transform_indices = @transform_0, window_bounds = array<i64: 2, 32>}, {transform_indices = @transform_1, window_bounds = array<i64: 32, 256>}, {transform_indices = @transform_2, window_bounds = array<i64: 1, 256>}, {transform_indices = @transform_3, window_bounds = array<i64: 2, 256>}]} {
    %c0 = arith.constant 0 : index
    %c0_0 = arith.constant 0 : index
    %0 = vector.load %arg1[%c0, %c0_0] : memref<2x32xf32, #tpu.memory_space<vmem>>, vector<2x32xf32>
    %c0_1 = arith.constant 0 : index
    %c0_2 = arith.constant 0 : index
    %1 = vector.load %arg2[%c0_1, %c0_2] : memref<32x256xf32, #tpu.memory_space<vmem>>, vector<32x256xf32>
    %cst = arith.constant dense<0.000000e+00> : vector<2x256xf32>
    %2 = tpu.matmul %0, %1, %cst {dimension_numbers = #tpu.dot_dimension_numbers<[1], [0], [0], [1], [0, 0, 1, 1], [], []>} : vector<2x32xf32>, vector<32x256xf32>, vector<2x256xf32> -> vector<2x256xf32>
    %c0_3 = arith.constant 0 : index
    %c0_4 = arith.constant 0 : index
    %3 = vector.load %arg3[%c0_3, %c0_4] : memref<1x256xf32, #tpu.memory_space<vmem>>, vector<1x256xf32>
    %4 = vector.broadcast %3 : vector<1x256xf32> to vector<2x256xf32>
    %5 = arith.addf %2, %4 : vector<2x256xf32>
    %c0_5 = arith.constant 0 : index
    %c0_6 = arith.constant 0 : index
    %6 = vector.load %arg4[%c0_5, %c0_6] : memref<2x256xf32, #tpu.memory_space<vmem>>, vector<2x256xf32>
    tpu.vector_store %arg4[%c0_5, %c0_6], %5 {strides = array<i32>} : memref<2x256xf32, #tpu.memory_space<vmem>>, vector<2x256xf32>,
    return
  }
  func.func @transform_0(%arg0: i32) -> (i32, i32) {
    %c0_i32 = arith.constant 0 : i32
    %c0_i32_0 = arith.constant 0 : i32
    %c0_i32_1 = arith.constant 0 : i32
    return %c0_i32, %c0_i32_0 : i32, i32
  }
  func.func @transform_1(%arg0: i32) -> (i32, i32) {
    %c0_i32 = arith.constant 0 : i32
    %c0_i32_0 = arith.constant 0 : i32
    return %c0_i32, %arg0 : i32, i32
  }
  func.func @transform_2(%arg0: i32) -> (i32, i32) {
    %c0_i32 = arith.constant 0 : i32
    %c0_i32_0 = arith.constant 0 : i32
    return %c0_i32, %arg0 : i32, i32
  }
  func.func @transform_3(%arg0: i32) -> (i32, i32) {
    %c0_i32 = arith.constant 0 : i32
    %c0_i32_0 = arith.constant 0 : i32
    return %c0_i32, %arg0 : i32, i32
  }
}

</mosaic_0001>

<bundles_post_ra>
// kernel: decoder_forward.1
= control target key start
LH: loop header
LB: loop body
LE: loop exit
PB: predicated region body
PF: predicated region fallthrough
CT: control target
= control target key end

     0   :  { %8 = vsyncpa [#allocation3], 0  ;;  %s249_s0 = inlined_call_operand.hbm [shape: f32[2,32], index: 0, kind: input, shape index: {}]   ;;  %s250_s1 = inlined_call_operand.hbm [shape: f32[32,256], index: 1, kind: input, shape index: {}]   ;;  %s251_s2 = inlined_call_operand.hbm [shape: f32[1,256], index: 2, kind: input, shape index: {}]   ;;  %s252_s3 = inlined_call_operand.vmem [shape: f32[2,256], index: 3, kind: output, shape index: {}]  }
   0x1   :  { %9 = vsyncpa [#allocation5], 0  ;;  %s25_s14 = sshll.u32 %s250_s1, 4  ;;  %s212_s15 = smov [#allocation4]   ;;  %s26_s14 = int_to_ptr.hbm [resolvable:$true] %s25_s14 }
   0x2   :  { %s27_s16 = sshll.u32 %s212_s15, 4  ;;  %s15_s19 = sshll.u32 %s249_s0, 4  ;;  %s28_s16 = int_to_ptr.vmem [resolvable:$true] %s27_s16  ;;  %s16_s19 = int_to_ptr.hbm [resolvable:$true] %s15_s19 }
   0x3   :  { %s213_s20 = smov 256   ;;  %s214_s21 = smov 16  }
   0x4   :  { %33 = dma.hbm_to_vmem [thread:$0]  %s26_s14, 1024, %s28_s16, [#allocation5], %s213_s20, %s213_s20, %s214_s21  }
   0x5   :  { %s215_s22 = smov [#allocation2]   ;;  %s39_s26 = sshll.u32 %s251_s2, 4  ;;  %s40_s26 = int_to_ptr.hbm [resolvable:$true] %s39_s26 }
   0x6   :  { %s17_s23 = sshll.u32 %s215_s22, 4  ;;  %s216_s1 = smov [#allocation6]   ;;  %s18_s23 = int_to_ptr.vmem [resolvable:$true] %s17_s23 }
   0x7   :  { %20 = dma.hbm_to_vmem [thread:$0]  %s16_s19, 32, %s18_s23, [#allocation3]  }
   0x8   :  { %s41_s27 = sshll.u32 %s216_s1, 4  ;;  %s42_s27 = int_to_ptr.vmem [resolvable:$true] %s41_s27 }
   0x9   :  { %44 = dma.hbm_to_vmem [thread:$0]  %s40_s26, 32, %s42_s27, [#allocation5]  }
   0xa   :  { %208 = dma.done.wait [#allocation3], 32  }
   0xb   :  { %209 = vsyncadd [#allocation3], 4294967264 }
   0xc   :  { %210 = dma.done.wait [#allocation5], 1056  }
   0xd   :  { %211 = vsyncadd [#allocation5], 4294966240  ;;  %v65_v0 = vld [vmem:[#allocation4 + $0x38] sm:$0xff]  ;;  %v64_v1 = vld [vmem:[#allocation4 + $0x30] sm:$0xff]  ;;  %vm72_vm0 = vcmask 261120   ;;  %vm119_vm1 = vcmask 1041408  }
   0xe   :  { %v63_v2 = vld [vmem:[#allocation4 + $0x28] sm:$0xff]  ;;  %108 = vmatpush.msra.mxu1 %v65_v0  ;;  %88 = vmatpush.msra.mxu0 %v64_v1  ;;  %v62_v3 = vld [vmem:[#allocation4 + $0x20] sm:$0xff]  ;;  %v61_v4 = vld [vmem:[#allocation4 + $0x18] sm:$0xff] }
   0xf   :  { %v60_v5 = vld [vmem:[#allocation4 + $0x10] sm:$0xff]  ;;  %v59_v6 = vld [vmem:[#allocation4 + $0x8] sm:$0xff]  ;;  %v58_v7 = vld [vmem:[#allocation4] sm:$0xff] }
  0x10   :  { %109 = vmatpush.msra.mxu1 %v63_v2  ;;  %89 = vmatpush.msra.mxu0 %v62_v3  ;;  %v57_v8 = vld [vmem:[#allocation2] sm:$0x3]  ;;  %v66_v9 = vld [vmem:[#allocation6] sm:$0x3] }
  0x11   :  { %v69_v10 = vperm.slane %v66_v9, 1  ;;  %v68_v11 = vperm.slane %v66_v9, 0 }
  0x12   :  { %110 = vmatpush.msra.mxu1 %v61_v4  ;;  %90 = vmatpush.msra.mxu0 %v60_v5 }
  0x14   :  { %111 = vmatpush.msra.mxu1 %v59_v6  ;;  %91 = vmatpush.msra.mxu0 %v58_v7 }
  0x15   :  { %130 = vmatmul.msk.f32.vlgmr.msra.gmra.mxu1 %vm72_vm0, %v57_v8  ;;  %129 = vmatmul.msk.f32.vlgmr.msra.gmra.mxu0 %vm72_vm0, %v57_v8 }
  0x92   :  { %v113_v12 = vpop.f32.mrf.mxu1  ;;  %v93_v13 = vpop.f32.mrf.mxu0 }
  0x93   :  { %v114_v14 = vadd.f32 %v113_v12, %v69_v10  ;;  %v94_v15 = vadd.f32 %v93_v13, %v68_v11 }
  0x95   :  { %v118_v16 = vrot.slane %v114_v14, 6 }
  0x97   :  { %v120_v17 = vsel %vm119_vm1, %v94_v15, %v118_v16 }
  0x98   :  { %122 = vst [vmem:[%s252_s3] sm:$0xf] %v120_v17 }
  0x99   :  { %127 = vsyncpa [#allocation3], 1 }
  0x9a   :  { %128 = vsyncpa [#allocation5], 1 }

</bundles_post_ra>
